<compile_context>
chip_gen: v7x
topology: tpu7x:2x2x1
jax: 0.10.0
libtpu: 0.0.40
codegen_flags: <defaults>
</compile_context>

<pallas_src>
import math

import jax
import jax.numpy as jnp
from jax.experimental import pallas as pl
from jax.experimental.pallas import tpu as pltpu

_MIB = 1 << 20


def _round_up(n, m):
    return ((n + m - 1) // m) * m


def _pad2d(a, rows, cols):
    pr, pc = rows - a.shape[0], cols - a.shape[1]
    if pr or pc:
        a = jnp.pad(a, ((0, pr), (0, pc)))
    return a


# ---------------------------------------------------------------------------
# Per-generation tiling / codegen configuration.
# ---------------------------------------------------------------------------
_GEN_CONFIG = {
    # tm: token tile; th_cap: hidden-dim chunk cap; gelu_approx: tanh-GELU on
    # the EUP (bf16-VPU/EUP chips only); vmem_cap: explicit scoped-VMEM
    # ceiling (None -> leave compiler default); core_parallel: split the token
    # tile axis across the 2 TensorCores (v7x).
    "v5e": dict(tm=256, th_cap=4096, gelu_approx=False,
                vmem_cap=100 * _MIB, core_parallel=False),
    "v6e": dict(tm=512, th_cap=1024, gelu_approx=True,
                vmem_cap=100 * _MIB, core_parallel=False),
    "v7x": dict(tm=512, th_cap=512, gelu_approx=True,
                vmem_cap=48 * _MIB, core_parallel=True),
    # Unknown chip: conservative tiles, do not touch the scoped VMEM limit.
    "unknown": dict(tm=256, th_cap=512, gelu_approx=False,
                    vmem_cap=None, core_parallel=False),
}


def _tpu_generation():
    try:
        kind = jax.devices()[0].device_kind.lower()
    except Exception:
        return "unknown"
    if "v5 lite" in kind or "v5e" in kind or "v5lite" in kind:
        return "v5e"
    if "v6 lite" in kind or "v6e" in kind or "v6lite" in kind:
        return "v6e"
    if "v7" in kind or "7x" in kind:
        return "v7x"
    return "unknown"


def _working_set_bytes(tm, th, c_in_p, c_out_p, cdt_bytes, out_bytes, use_acc):
    """Estimate of the double-buffered per-step VMEM working set."""
    x_tile = tm * c_in_p * cdt_bytes
    w1_chunk = c_in_p * th * cdt_bytes
    w2_chunk = th * c_out_p * cdt_bytes
    b1_chunk = 8 * th * 4          # (1, th) f32, padded to 8 sublanes
    b2_blk = 8 * c_out_p * 4
    out_tile = tm * c_out_p * out_bytes
    acc = tm * c_out_p * 4 if use_acc else 0
    return 2 * (x_tile + w1_chunk + w2_chunk + b1_chunk + b2_blk + out_tile) + acc


def _gelu(h, approx):
    if approx:
        # tanh-form GELU: transcendental goes to the EUP slot (v6e/v7x).
        c = math.sqrt(2.0 / math.pi)
        return 0.5 * h * (1.0 + jnp.tanh(c * (h + 0.044715 * (h * h * h))))
    # Exact erf GELU (nn.GELU default), kept in f32 (v5e: no bf16 VPU/EUP).
    return 0.5 * h * (1.0 + jax.lax.erf(h * (1.0 / math.sqrt(2.0))))


def _make_mlp_kernel(acc_in_output, gelu_approx):
    def kernel(x_ref, w1_ref, b1_ref, w2_ref, b2_ref, o_ref, *scratch):
        # Grid: (M_p // tm, H_p // th). Axis 0 = token tiles (parallel /
        # core-parallel), axis 1 = hidden-dim reduction ("arbitrary").
        j = pl.program_id(1)
        acc_ref = o_ref if acc_in_output else scratch[0]

        @pl.when(j == 0)
        def _init():
            acc_ref[...] = jnp.zeros_like(acc_ref)

        # fc1 chunk: MXU matmul with f32 accumulation; bias add in f32.
        h = jnp.dot(x_ref[...], w1_ref[...],
                    preferred_element_type=jnp.float32)
        h = h + b1_ref[...]

        h = _gelu(h, gelu_approx)

        # drop1 / drop2: p = 0.0 -> identity.

        # fc2 partial contribution of this hidden-dim chunk.
        acc_ref[...] += jnp.dot(h.astype(w2_ref.dtype), w2_ref[...],
                                preferred_element_type=jnp.float32)

        @pl.when(j == pl.num_programs(1) - 1)
        def _finalize():
            if acc_in_output:
                o_ref[...] += b2_ref[...]
            else:
                o_ref[...] = (acc_ref[...] + b2_ref[...]).astype(o_ref.dtype)

    return kernel


def prepare_mlp_params(w1, b1, w2, b2, *, th=None,
                       compute_dtype=jnp.bfloat16, generation=None):
    """Cast + zero-pad the weights once (hoisted out of the per-call path).

    w1: (C_in, H), b1: (H,), w2: (H, C_out), b2: (C_out,) -- (in, out) layout.
    """
    gen = generation if generation is not None else _tpu_generation()
    cfg = _GEN_CONFIG[gen]
    C_in, H = w1.shape
    C_out = w2.shape[1]

    C_in_p = _round_up(C_in, 128)
    C_out_p = _round_up(C_out, 128)
    H_128 = _round_up(H, 128)

    if th is None:
        th = min(cfg["th_cap"], H_128)
        budget = cfg["vmem_cap"] if cfg["vmem_cap"] is not None else 24 * _MIB
        cdt_bytes = jnp.dtype(compute_dtype).itemsize
        # Shrink th (at the generation-default tm) until the working set fits.
        while th > 256 and _working_set_bytes(
                cfg["tm"], th, C_in_p, C_out_p, cdt_bytes, 4, True) > budget:
            th //= 2
    th = _round_up(min(th, H_128), 128)
    H_p = _round_up(H, th)

    return dict(
        w1p=_pad2d(w1.astype(compute_dtype), C_in_p, H_p),
        b1p=_pad2d(b1.reshape(1, H).astype(jnp.float32), 1, H_p),
        w2p=_pad2d(w2.astype(compute_dtype), H_p, C_out_p),
        b2p=_pad2d(b2.reshape(1, C_out).astype(jnp.float32), 1, C_out_p),
        dims=(C_in, H, C_out, C_in_p, H_p, C_out_p, th),
        compute_dtype=compute_dtype,
        generation=gen,
    )


def mlp_pallas(x, params, *, tm=None):
    """x: (B, N, C_in); params: output of prepare_mlp_params."""
    gen = params["generation"]
    cfg = _GEN_CONFIG[gen]
    C_in, H, C_out, C_in_p, H_p, C_out_p, th = params["dims"]
    cdt = params["compute_dtype"]
    w1p, b1p, w2p, b2p = params["w1p"], params["b1p"], params["w2p"], params["b2p"]

    B, N, _ = x.shape
    M = B * N
    out_dtype = x.dtype
    out_bytes = jnp.dtype(out_dtype).itemsize
    cdt_bytes = jnp.dtype(cdt).itemsize

    # f32 output -> accumulate directly into the resident output block and
    # drop the (tm, C_out_p) f32 scratch + finalize copy pass.
    acc_in_output = (out_dtype == jnp.float32)

    if tm is None:
        tm = cfg["tm"]
    # 16-row alignment: dense bf16 (16, 128) sublane packing even for tiny M.
    tm = _round_up(max(16, min(tm, _round_up(M, 16))), 16)

    budget = cfg["vmem_cap"] if cfg["vmem_cap"] is not None else 24 * _MIB
    while tm > 64 and _working_set_bytes(
            tm, th, C_in_p, C_out_p, cdt_bytes, out_bytes,
            not acc_in_output) > budget:
        tm = _round_up(max(16, tm // 2), 16)

    M_p = _round_up(M, tm)
    grid = (M_p // tm, H_p // th)

    x2d = _pad2d(x.reshape(M, C_in).astype(cdt), M_p, C_in_p)

    # Honest HBM-traffic hint: weights re-streamed once per token tile when
    # the hidden dim is chunked; fetched once (resident) when grid[1] == 1.
    weight_streams = grid[0] if grid[1] > 1 else 1
    cost = pl.CostEstimate(
        flops=2 * M_p * C_in_p * H_p + 2 * M_p * H_p * C_out_p,
        transcendentals=M_p * H_p,
        bytes_accessed=(x2d.size * x2d.dtype.itemsize
                        + weight_streams * (w1p.size * w1p.dtype.itemsize
                                            + w2p.size * w2p.dtype.itemsize)
                        + b1p.size * b1p.dtype.itemsize
                        + b2p.size * b2p.dtype.itemsize
                        + M_p * C_out_p * out_bytes),
    )

    # Token-tile axis: core-parallel on v7x (2 TCs) when the tile count splits
    # evenly, plain "parallel" otherwise; hidden-dim axis is a reduction.
    if (cfg["core_parallel"] and grid[0] >= 2 and grid[0] % 2 == 0
            and hasattr(pltpu, "CORE_PARALLEL")):
        dim_semantics = (pltpu.CORE_PARALLEL, pltpu.ARBITRARY)
    else:
        dim_semantics = ("parallel", "arbitrary")

    vmem_limit = None
    if cfg["vmem_cap"] is not None:
        needed = _working_set_bytes(tm, th, C_in_p, C_out_p, cdt_bytes,
                                    out_bytes, not acc_in_output)
        vmem_limit = int(min(cfg["vmem_cap"],
                             max(needed * 5 // 4 + 4 * _MIB, 32 * _MIB)))

    scratch_shapes = [] if acc_in_output else [
        pltpu.VMEM((tm, C_out_p), jnp.float32)]

    out2d = pl.pallas_call(
        _make_mlp_kernel(acc_in_output, cfg["gelu_approx"]),
        out_shape=jax.ShapeDtypeStruct((M_p, C_out_p), out_dtype),
        grid_spec=pltpu.PrefetchScalarGridSpec(
            num_scalar_prefetch=0,
            grid=grid,
            in_specs=[
                pl.BlockSpec((tm, C_in_p), lambda i, j: (i, 0)),    # x tile
                pl.BlockSpec((C_in_p, th), lambda i, j: (0, j)),    # w1 chunk
                pl.BlockSpec((1, th), lambda i, j: (0, j)),         # b1 chunk
                pl.BlockSpec((th, C_out_p), lambda i, j: (j, 0)),   # w2 chunk
                pl.BlockSpec((1, C_out_p), lambda i, j: (0, 0)),    # b2
            ],
            out_specs=pl.BlockSpec((tm, C_out_p), lambda i, j: (i, 0)),
            scratch_shapes=scratch_shapes,
        ),
        compiler_params=pltpu.CompilerParams(
            dimension_semantics=dim_semantics,
            vmem_limit_bytes=vmem_limit),
        cost_estimate=cost,
    )(x2d, w1p, b1p, w2p, b2p)

    return out2d[:M, :C_out].reshape(B, N, C_out)


def mlp_reference(x, w1, b1, w2, b2, compute_dtype=None, gelu_approx=False):
    """Pure-JAX reference. compute_dtype mimics the kernel's mixed precision."""
    cdt = compute_dtype if compute_dtype is not None else x.dtype
    xd, w1d, w2d = x.astype(cdt), w1.astype(cdt), w2.astype(cdt)
    h = jnp.einsum("bnc,ch->bnh", xd, w1d,
                   preferred_element_type=jnp.float32) + b1.astype(jnp.float32)
    h = _gelu(h, gelu_approx)
    o = jnp.einsum("bnh,ho->bno", h.astype(cdt), w2d,
                   preferred_element_type=jnp.float32) + b2.astype(jnp.float32)
    return o.astype(x.dtype)


if __name__ == "__main__":
    # Small shapes consistent with the module: batch=2, seq=8,
    # in_features=32, hidden_features=64, out_features=32 (defaults to in).
    B, N = 2, 8
    in_features, hidden_features = 32, 64
    out_features = in_features

    key = jax.random.PRNGKey(0)
    kx, kw1, kb1, kw2, kb2 = jax.random.split(key, 5)

    x = jax.random.normal(kx, (B, N, in_features), dtype=jnp.float32)

    # Deterministic param init (PyTorch Linear-style uniform bounds), stored
    # pre-transposed as (in, out) for the kernel.
    bound1 = 1.0 / math.sqrt(in_features)
    w1 = jax.random.uniform(kw1, (in_features, hidden_features),
                            minval=-bound1, maxval=bound1, dtype=jnp.float32)
    b1 = jax.random.uniform(kb1, (hidden_features,),
                            minval=-bound1, maxval=bound1, dtype=jnp.float32)
    bound2 = 1.0 / math.sqrt(hidden_features)
    w2 = jax.random.uniform(kw2, (hidden_features, out_features),
                            minval=-bound2, maxval=bound2, dtype=jnp.float32)
    b2 = jax.random.uniform(kb2, (out_features,),
                            minval=-bound2, maxval=bound2, dtype=jnp.float32)

    gen = _tpu_generation()
    gelu_approx = _GEN_CONFIG[gen]["gelu_approx"]

    # Weight cast/pad hoisted out of the per-call path: prepare once, reuse.
    params = prepare_mlp_params(w1, b1, w2, b2)

    out = mlp_pallas(x, params)
    out = jax.block_until_ready(out)
    assert out.shape == (B, N, out_features)

    # Precision-matched reference (bf16 matmul inputs, f32 accumulation, same
    # GELU variant as the kernel picked for this chip generation).
    ref_matched = mlp_reference(x, w1, b1, w2, b2,
                                compute_dtype=jnp.bfloat16,
                                gelu_approx=gelu_approx)
    assert jnp.allclose(out, ref_matched, atol=5e-3, rtol=5e-3), \
        "mismatch vs bf16-matched reference"

    # Full-f32, exact-erf reference sanity check (bf16 matmuls and, on
    # v6e/v7x, tanh-form GELU are deliberate precision tradeoffs -> looser).
    ref_f32 = mlp_reference(x, w1, b1, w2, b2)
    assert jnp.allclose(out, ref_f32, atol=1e-1, rtol=1e-1), \
        "mismatch vs f32 reference"

    print("KERNEL_OK")
</pallas_src>

<mosaic_0001>
module attributes {stable_mosaic.version = 11 : i64} {
  func.func @kernel(%arg0: i32, %arg1: i32, %arg2: memref<16x128xbf16, #tpu.memory_space<vmem>>, %arg3: memref<128x128xbf16, #tpu.memory_space<vmem>>, %arg4: memref<1x128xf32, #tpu.memory_space<vmem>>, %arg5: memref<128x128xbf16, #tpu.memory_space<vmem>>, %arg6: memref<1x128xf32, #tpu.memory_space<vmem>>, %arg7: memref<16x128xf32, #tpu.memory_space<vmem>>) attributes {dimension_semantics = [#tpu.dimension_semantics<parallel>, #tpu.dimension_semantics<arbitrary>], iteration_bounds = array<i64: 1, 1>, scalar_prefetch = 0 : i64, scratch_operands = 0 : i64, tpu.core_type = #tpu.core_type<tc>, window_params = [{transform_indices = @transform_0, window_bounds = array<i64: 16, 128>}, {transform_indices = @transform_1, window_bounds = array<i64: 128, 128>}, {transform_indices = @transform_2, window_bounds = array<i64: 1, 128>}, {transform_indices = @transform_3, window_bounds = array<i64: 128, 128>}, {pipeline_mode = #tpu.pipeline_mode<synchronous>, transform_indices = @transform_4, window_bounds = array<i64: 1, 128>}, {transform_indices = @transform_5, window_bounds = array<i64: 16, 128>}]} {
    %c0_i32 = arith.constant 0 : i32
    %0 = arith.cmpi eq, %arg1, %c0_i32 : i32
    %1 = arith.extui %0 : i1 to i32
    %c0_i32_0 = arith.constant 0 : i32
    %2 = arith.cmpi ne, %1, %c0_i32_0 : i32
    scf.if %2 {
      %cst_18 = arith.constant 0.000000e+00 : f32
      %26 = vector.broadcast %cst_18 : f32 to vector<16x128xf32>
      %c0_19 = arith.constant 0 : index
      %c0_20 = arith.constant 0 : index
      %27 = vector.load %arg7[%c0_19, %c0_20] : memref<16x128xf32, #tpu.memory_space<vmem>>, vector<16x128xf32>
      tpu.vector_store %arg7[%c0_19, %c0_20], %26 {strides = array<i32>} : memref<16x128xf32, #tpu.memory_space<vmem>>, vector<16x128xf32>,
    } else {
    }
    %c0 = arith.constant 0 : index
    %c0_1 = arith.constant 0 : index
    %3 = vector.load %arg2[%c0, %c0_1] : memref<16x128xbf16, #tpu.memory_space<vmem>>, vector<16x128xbf16>
    %c0_2 = arith.constant 0 : index
    %c0_3 = arith.constant 0 : index
    %4 = vector.load %arg3[%c0_2, %c0_3] : memref<128x128xbf16, #tpu.memory_space<vmem>>, vector<128x128xbf16>
    %cst = arith.constant dense<0.000000e+00> : vector<16x128xf32>
    %5 = tpu.matmul %3, %4, %cst {dimension_numbers = #tpu.dot_dimension_numbers<[1], [0], [0], [1], [0, 0, 1, 1], [], []>} : vector<16x128xbf16>, vector<128x128xbf16>, vector<16x128xf32> -> vector<16x128xf32>
    %c0_4 = arith.constant 0 : index
    %c0_5 = arith.constant 0 : index
    %6 = vector.load %arg4[%c0_4, %c0_5] : memref<1x128xf32, #tpu.memory_space<vmem>>, vector<1x128xf32>
    %7 = vector.broadcast %6 : vector<1x128xf32> to vector<16x128xf32>
    %8 = arith.addf %5, %7 : vector<16x128xf32>
    %cst_6 = arith.constant 5.000000e-01 : f32
    %9 = vector.broadcast %cst_6 : f32 to vector<16x128xf32>
    %10 = arith.mulf %9, %8 : vector<16x128xf32>
    %cst_7 = arith.constant 0.707106769 : f32
    %11 = vector.broadcast %cst_7 : f32 to vector<16x128xf32>
    %12 = arith.mulf %8, %11 : vector<16x128xf32>
    %13 = math.erf %12 : vector<16x128xf32>
    %cst_8 = arith.constant 1.000000e+00 : f32
    %14 = vector.broadcast %cst_8 : f32 to vector<16x128xf32>
    %15 = arith.addf %14, %13 : vector<16x128xf32>
    %16 = arith.mulf %10, %15 : vector<16x128xf32>
    %c0_9 = arith.constant 0 : index
    %c0_10 = arith.constant 0 : index
    %17 = vector.load %arg7[%c0_9, %c0_10] : memref<16x128xf32, #tpu.memory_space<vmem>>, vector<16x128xf32>
    %18 = arith.truncf %16 : vector<16x128xf32> to vector<16x128xbf16>
    %c0_11 = arith.constant 0 : index
    %c0_12 = arith.constant 0 : index
    %19 = vector.load %arg5[%c0_11, %c0_12] : memref<128x128xbf16, #tpu.memory_space<vmem>>, vector<128x128xbf16>
    %cst_13 = arith.constant dense<0.000000e+00> : vector<16x128xf32>
    %20 = tpu.matmul %18, %19, %cst_13 {dimension_numbers = #tpu.dot_dimension_numbers<[1], [0], [0], [1], [0, 0, 1, 1], [], []>} : vector<16x128xbf16>, vector<128x128xbf16>, vector<16x128xf32> -> vector<16x128xf32>
    %21 = arith.addf %17, %20 : vector<16x128xf32>
    %c0_14 = arith.constant 0 : index
    %c0_15 = arith.constant 0 : index
    %22 = vector.load %arg7[%c0_14, %c0_15] : memref<16x128xf32, #tpu.memory_space<vmem>>, vector<16x128xf32>
    tpu.vector_store %arg7[%c0_14, %c0_15], %21 {strides = array<i32>} : memref<16x128xf32, #tpu.memory_space<vmem>>, vector<16x128xf32>,
    %c0_i32_16 = arith.constant 0 : i32
    %23 = arith.cmpi eq, %arg1, %c0_i32_16 : i32
    %24 = arith.extui %23 : i1 to i32
    %c0_i32_17 = arith.constant 0 : i32
    %25 = arith.cmpi ne, %24, %c0_i32_17 : i32
    scf.if %25 {
      %c0_18 = arith.constant 0 : index
      %c0_19 = arith.constant 0 : index
      %26 = vector.load %arg7[%c0_18, %c0_19] : memref<16x128xf32, #tpu.memory_space<vmem>>, vector<16x128xf32>
      %c0_20 = arith.constant 0 : index
      %c0_21 = arith.constant 0 : index
      %27 = vector.load %arg6[%c0_20, %c0_21] : memref<1x128xf32, #tpu.memory_space<vmem>>, vector<1x128xf32>
      %28 = vector.broadcast %27 : vector<1x128xf32> to vector<16x128xf32>
      %29 = arith.addf %26, %28 : vector<16x128xf32>
      %c0_22 = arith.constant 0 : index
      %c0_23 = arith.constant 0 : index
      %30 = vector.load %arg7[%c0_22, %c0_23] : memref<16x128xf32, #tpu.memory_space<vmem>>, vector<16x128xf32>
      tpu.vector_store %arg7[%c0_22, %c0_23], %29 {strides = array<i32>} : memref<16x128xf32, #tpu.memory_space<vmem>>, vector<16x128xf32>,
    } else {
    }
    return
  }
  func.func @transform_0(%arg0: i32, %arg1: i32) -> (i32, i32) {
    %c0_i32 = arith.constant 0 : i32
    %c0_i32_0 = arith.constant 0 : i32
    return %arg0, %c0_i32 : i32, i32
  }
  func.func @transform_1(%arg0: i32, %arg1: i32) -> (i32, i32) {
    %c0_i32 = arith.constant 0 : i32
    %c0_i32_0 = arith.constant 0 : i32
    return %c0_i32, %arg1 : i32, i32
  }
  func.func @transform_2(%arg0: i32, %arg1: i32) -> (i32, i32) {
    %c0_i32 = arith.constant 0 : i32
    %c0_i32_0 = arith.constant 0 : i32
    return %c0_i32, %arg1 : i32, i32
  }
  func.func @transform_3(%arg0: i32, %arg1: i32) -> (i32, i32) {
    %c0_i32 = arith.constant 0 : i32
    %c0_i32_0 = arith.constant 0 : i32
    return %arg1, %c0_i32 : i32, i32
  }
  func.func @transform_4(%arg0: i32, %arg1: i32) -> (i32, i32) {
    %c0_i32 = arith.constant 0 : i32
    %c0_i32_0 = arith.constant 0 : i32
    %c0_i32_1 = arith.constant 0 : i32
    return %c0_i32, %c0_i32_0 : i32, i32
  }
  func.func @transform_5(%arg0: i32, %arg1: i32) -> (i32, i32) {
    %c0_i32 = arith.constant 0 : i32
    %c0_i32_0 = arith.constant 0 : i32
    return %arg0, %c0_i32 : i32, i32
  }
}

</mosaic_0001>

<bundles_post_ra>
// kernel: tpu_custom_call.1
= control target key start
LH: loop header
LB: loop body
LE: loop exit
PB: predicated region body
PF: predicated region fallthrough
CT: control target
= control target key end

     0   :  { %10 = vsyncpa [#allocation3], 0  ;;  %s657_s0 = inlined_call_operand.hbm [shape: bf16[16,128], index: 0, kind: input, shape index: {}]   ;;  %s658_s1 = inlined_call_operand.hbm [shape: bf16[128,128], index: 1, kind: input, shape index: {}]   ;;  %s659_s2 = inlined_call_operand.vmem [shape: f32[1,128], index: 2, kind: input, shape index: {}]   ;;  %s660_s3 = inlined_call_operand.hbm [shape: bf16[128,128], index: 3, kind: input, shape index: {}]   ;;  %s661_s4 = inlined_call_operand.vmem [shape: f32[1,128], index: 4, kind: input, shape index: {}]   ;;  %s662_s5 = inlined_call_operand.hbm [shape: f32[16,128], index: 5, kind: output, shape index: {}]  }
   0x1   :  { %11 = vsyncpa [#allocation6], 0 }
   0x2   :  { %12 = vsyncpa [#allocation4], 0  ;;  %s547_s18 = smov [#allocation5]   ;;  %s548_s20 = smov [#allocation2]  }
   0x3   :  { %s30_s19 = sshll.u32 %s547_s18, 4  ;;  %s18_s21 = sshll.u32 %s548_s20, 4  ;;  %s31_s19 = int_to_ptr.vmem [resolvable:$true] %s30_s19  ;;  %s587_s21 = int_to_ptr.vmem [resolvable:$true] %s18_s21 }
   0x4   :  { %s453_s24 = scalar_lea.hbm %s658_s1, 1024 }
   0x5   :  { %p454_p0 = scmp.ne.s32.totalorder %s658_s1, %s453_s24  ;;  %p457_p1 = scmp.lt.u32.totalorder %s453_s24, %s658_s1 }
   0x7   :  { %p459_p2 = pnand %p457_p1, %p454_p0 }
   0x9   :  { %462 = shalt.err (!%p459_p2)
}
   0xa   :  { %s463_s29 = scalar_lea.vmem %s31_s19, 1024  ;;  %p468_p4 = scmp.lt.s32.totalorder %s31_s19, %s31_s19 }
   0xb   :  { %p464_p3 = scmp.ne.s32.totalorder %s31_s19, %s463_s29  ;;  %p469_p5 = scmp.lt.s32.totalorder %s463_s29, %s463_s29 }
   0xd   :  { %p470_p6 = por %p469_p5, %p468_p4 }
   0xf   :  { %p471_p7 = pnand %p470_p6, %p464_p3 }
  0x11   :  { %474 = shalt.err (!%p471_p7)
}
  0x12   :  { %s549_s30 = smov 64   ;;  %s550_s6 = smov 4  }
  0x13   :  { %36 = dma.hbm_to_vmem [thread:$0]  %s658_s1, 1024, %s31_s19, [#allocation6], %s549_s30, %s549_s30, %s550_s6  }
  0x14   :  { %s475_s11 = scalar_lea.hbm %s657_s0, 128 }
  0x15   :  { %p476_p8 = scmp.ne.s32.totalorder %s657_s0, %s475_s11  ;;  %p479_p9 = scmp.lt.u32.totalorder %s475_s11, %s657_s0 }
  0x17   :  { %p481_p10 = pnand %p479_p9, %p476_p8 }
  0x19   :  { %484 = shalt.err (!%p481_p10)
}
  0x1a   :  { %s485_s16 = scalar_lea.vmem %s587_s21, 128  ;;  %p490_p12 = scmp.lt.s32.totalorder %s587_s21, %s587_s21 }
  0x1b   :  { %p486_p11 = scmp.ne.s32.totalorder %s587_s21, %s485_s16  ;;  %p491_p13 = scmp.lt.s32.totalorder %s485_s16, %s485_s16 }
  0x1d   :  { %p492_p0 = por %p491_p13, %p490_p12 }
  0x1f   :  { %p493_p1 = pnand %p492_p0, %p486_p11 }
  0x21   :  { %496 = shalt.err (!%p493_p1)
}
  0x22   :  { %24 = dma.hbm_to_vmem [thread:$0]  %s657_s0, 128, %s587_s21, [#allocation3], %s549_s30, %s549_s30, %s550_s6  }
  0x23   :  { %s551_s18 = smov [#allocation7]   ;;  %s497_s23 = scalar_lea.hbm %s660_s3, 1024 }
  0x24   :  { %s44_s19 = sshll.u32 %s551_s18, 4  ;;  %p498_p2 = scmp.ne.s32.totalorder %s660_s3, %s497_s23  ;;  %s45_s19 = int_to_ptr.vmem [resolvable:$true] %s44_s19 }
  0x25   :  { %p501_p3 = scmp.lt.u32.totalorder %s497_s23, %s660_s3 }
  0x27   :  { %p503_p4 = pnand %p501_p3, %p498_p2 }
  0x29   :  { %506 = shalt.err (!%p503_p4)
}
  0x2a   :  { %s507_s28 = scalar_lea.vmem %s45_s19, 1024  ;;  %p512_p6 = scmp.lt.s32.totalorder %s45_s19, %s45_s19 }
  0x2b   :  { %p508_p5 = scmp.ne.s32.totalorder %s45_s19, %s507_s28  ;;  %p513_p7 = scmp.lt.s32.totalorder %s507_s28, %s507_s28 }
  0x2d   :  { %p514_p8 = por %p513_p7, %p512_p6 }
  0x2f   :  { %p515_p9 = pnand %p514_p8, %p508_p5 }
  0x31   :  { %518 = shalt.err (!%p515_p9)
}
  0x32   :  { %50 = dma.hbm_to_vmem [thread:$0]  %s660_s3, 1024, %s45_s19, [#allocation6], %s549_s30, %s549_s30, %s550_s6  }
  0x33   :  { %541 = dma.done.wait [#allocation3], 128  }
  0x34   :  { %542 = vsyncadd [#allocation3], 4294967168 }
  0x35   :  { %543 = dma.done.wait [#allocation6], 2048  }
  0x36   :  { %544 = vsyncadd [#allocation6], 4294965248  ;;  %v552_v0 = vmov 0.0   ;;  %vm553_vm0 = vmmov 0   ;;  %v432_v1 = vld [vmem:[#allocation5] sm:$0xff]   ;;  %v433_v2 = vld [vmem:[#allocation5 + $0x8] sm:$0xff]  }
  0x37   :  { %382 = vmatprep.subr.bf16.mxu0 %v552_v0  ;;  %398 = vmatprep.mubr.msk.bf16.mxu0 %vm553_vm0, %v552_v0  ;;  %v434_v3 = vld [vmem:[#allocation5 + $0x10] sm:$0xff]   ;;  %v441_v4 = vld [vmem:[#allocation7] sm:$0xff]   ;;  %v435_v5 = vld [vmem:[#allocation5 + $0x18] sm:$0xff]   ;;  %s554_s6 = smov [#allocation8]  }
  0x38   :  { %402 = vmatprep.subr.bf16.mxu1 %v552_v0  ;;  %418 = vmatprep.mubr.msk.bf16.mxu1 %vm553_vm0, %v552_v0  ;;  %v442_v6 = vld [vmem:[#allocation7 + $0x8] sm:$0xff]   ;;  %v436_v7 = vld [vmem:[#allocation5 + $0x20] sm:$0xff]   ;;  %v438_v9 = vld [vmem:[#allocation5 + $0x30] sm:$0xff]   ;;  %s332_s7 = sshll.u32 %s554_s6, 4  ;;  %s333_s7 = int_to_ptr.vmem [resolvable:$true] %s332_s7 }
  0x39   :  { %383 = vmatpush3.bf16.msra.mxu0 %v432_v1  ;;  %403 = vmatpush3.bf16.msra.mxu1 %v441_v4  ;;  %v437_v8 = vld [vmem:[#allocation5 + $0x28] sm:$0xff]   ;;  %v439_v10 = vld [vmem:[#allocation5 + $0x38] sm:$0xff]   ;;  %v443_v12 = vld [vmem:[#allocation7 + $0x10] sm:$0xff]   ;;  %s519_s8 = scalar_lea.vmem %s333_s7, 256  ;;  %p524_p11 = scmp.lt.s32.totalorder %s333_s7, %s333_s7 }
  0x3a   :  { %384 = vmatprep.subr.bf16.mxu0 %v552_v0  ;;  %404 = vmatprep.subr.bf16.mxu1 %v552_v0  ;;  %v440_v11 = vld [vmem:[#allocation2] sm:$0xff]   ;;  %v445_v14 = vld [vmem:[#allocation7 + $0x20] sm:$0xff]   ;;  %v446_v15 = vld [vmem:[#allocation7 + $0x28] sm:$0xff]   ;;  %p520_p10 = scmp.ne.s32.totalorder %s333_s7, %s519_s8  ;;  %p525_p12 = scmp.lt.s32.totalorder %s519_s8, %s519_s8 }
  0x3b   :  { %v444_v13 = vld [vmem:[#allocation7 + $0x18] sm:$0xff]   ;;  %v447_v16 = vld [vmem:[#allocation7 + $0x30] sm:$0xff]  }
  0x3c   :  { %v448_v17 = vld [vmem:[#allocation7 + $0x38] sm:$0xff]   ;;  %p526_p13 = por %p525_p12, %p524_p11 }
  0x3d   :  { %385 = vmatpush3.bf16.msra.mxu0 %v433_v2  ;;  %405 = vmatpush3.bf16.msra.mxu1 %v442_v6  ;;  %v345_v18 = vld [vmem:[%s659_s2] ss:$0 sm:$0xff] }
  0x3e   :  { %386 = vmatprep.subr.bf16.mxu0 %v552_v0  ;;  %406 = vmatprep.subr.bf16.mxu1 %v552_v0  ;;  %v363_v37 = vld [vmem:[%s661_s4] ss:$0 sm:$0xff]  ;;  %p527_p0 = pnand %p526_p13, %p520_p10 }
  0x41   :  { %387 = vmatpush3.bf16.msra.mxu0 %v434_v3  ;;  %407 = vmatpush3.bf16.msra.mxu1 %v443_v12 }
  0x42   :  { %388 = vmatprep.subr.bf16.mxu0 %v552_v0  ;;  %408 = vmatprep.subr.bf16.mxu1 %v552_v0 }
  0x45   :  { %389 = vmatpush3.bf16.msra.mxu0 %v435_v5  ;;  %409 = vmatpush3.bf16.msra.mxu1 %v444_v13 }
  0x46   :  { %390 = vmatprep.subr.bf16.mxu0 %v552_v0  ;;  %410 = vmatprep.subr.bf16.mxu1 %v552_v0 }
  0x49   :  { %391 = vmatpush3.bf16.msra.mxu0 %v436_v7  ;;  %411 = vmatpush3.bf16.msra.mxu1 %v445_v14 }
  0x4a   :  { %392 = vmatprep.subr.bf16.mxu0 %v552_v0  ;;  %412 = vmatprep.subr.bf16.mxu1 %v552_v0 }
  0x4d   :  { %393 = vmatpush3.bf16.msra.mxu0 %v437_v8  ;;  %413 = vmatpush3.bf16.msra.mxu1 %v446_v15 }
  0x4e   :  { %394 = vmatprep.subr.bf16.mxu0 %v552_v0  ;;  %414 = vmatprep.subr.bf16.mxu1 %v552_v0 }
  0x51   :  { %395 = vmatpush3.bf16.msra.mxu0 %v438_v9  ;;  %415 = vmatpush3.bf16.msra.mxu1 %v447_v16 }
  0x52   :  { %396 = vmatprep.subr.bf16.mxu0 %v552_v0  ;;  %416 = vmatprep.subr.bf16.mxu1 %v552_v0 }
  0x55   :  { %397 = vmatpush3.bf16.msra.mxu0 %v439_v10  ;;  %417 = vmatpush3.bf16.msra.mxu1 %v448_v17 }
  0x58   :  { %399 = vmatmul.mubr.bf16.vlgmr.msra.gmra.mrb[0].mxu0 %v440_v11 }
 0x12b   :  { %v182_v19 = vpop.f32.mrb[0].mxu0 }
 0x12c   :  { %v183_v20 = vadd.f32 %v345_v18, %v182_v19  ;;  %v400_v21 = vpop.f32.mrb[1].mxu0 }
 0x12d   :  { %v185_v22 = vpop.f32.mrb[2].mxu0 }
 0x12e   :  { %v191_v23 = vmul.f32 0.70710677, %v183_v20  ;;  %v186_v24 = vadd.f32 %v345_v18, %v185_v22  ;;  %v401_v25 = vpop.f32.mrb[3].mxu0  ;;  %v189_v30 = vmul.f32 0.5, %v183_v20 }
 0x130   :  { %449 = verf.f32 %v191_v23  ;;  %v192_v26 = vmul.f32 0.70710677, %v186_v24  ;;  %v190_v31 = vmul.f32 0.5, %v186_v24 }
 0x132   :  { %451 = verf.f32 %v192_v26 }
 0x13a   :  { %v450_v27 = vpop.eup %449 }
 0x13b   :  { %v195_v28 = vadd.f32 1.0, %v450_v27 }
 0x13c   :  { %v452_v29 = vpop.eup %451 }
 0x13d   :  { %v196_v32 = vadd.f32 1.0, %v452_v29  ;;  %v197_v33 = vmul.f32 %v195_v28, %v189_v30 }
 0x13f   :  { %v198_v34 = vmul.f32 %v196_v32, %v190_v31 }
 0x141   :  { %v201_v35 = vpack.c.bf16 %v198_v34, %v197_v33 }
 0x143   :  { %419 = vmatmul.mubr.bf16.vlgmr.msra.gmra.mrb[0].mxu1 %v201_v35 }
 0x216   :  { %v300_v36 = vpop.f32.mrb[0].mxu1 }
 0x217   :  { %v420_v38 = vpop.f32.mrb[1].mxu1  ;;  %v323_v41 = vadd.f32 %v363_v37, %v300_v36 }
 0x218   :  { %v303_v39 = vpop.f32.mrb[2].mxu1 }
 0x219   :  { %v421_v40 = vpop.f32.mrb[3].mxu1  ;;  %v324_v42 = vadd.f32 %v363_v37, %v303_v39  ;;  %325 = vst [vmem:[#allocation8] sm:$0xff] %v323_v41 }
 0x21b   :  { %326 = vst [vmem:[#allocation8 + $0x8] sm:$0xff] %v324_v42 }
 0x21c   :  { %530 = shalt.err (!%p527_p0)
}
 0x21d   :  { %s531_s4 = scalar_lea.hbm %s662_s5, 256 }
 0x21e   :  { %p532_p1 = scmp.ne.s32.totalorder %s662_s5, %s531_s4  ;;  %p535_p2 = scmp.lt.u32.totalorder %s531_s4, %s662_s5 }
 0x220   :  { %p537_p3 = pnand %p535_p2, %p532_p1 }
 0x222   :  { %540 = shalt.err (!%p537_p3)
}
 0x223   :  { %s555_s15 = smov 128   ;;  %s556_s16 = smov 8  }
 0x224   :  { %338 = dma.vmem_to_hbm [thread:$0]  %s333_s7, 256, %s662_s5, [#allocation4], %s555_s15, %s555_s15, %s556_s16  }
 0x225   :  { %545 = dma.done.wait [#allocation4], 256  }
 0x226   :  { %546 = vsyncadd [#allocation4], 4294967040 }
 0x227   :  { %342 = vsyncpa [#allocation3], 1 }
 0x228   :  { %343 = vsyncpa [#allocation6], 1 }
 0x229   :  { %344 = vsyncpa [#allocation4], 1 }

</bundles_post_ra>
